<compile_context>
chip_gen: v7x
topology: tpu7x:2x2x1
jax: 0.10.0
libtpu: 0.0.40
codegen_flags: <defaults>
</compile_context>

<pallas_src>
import functools
import numpy as np
import jax
import jax.numpy as jnp
from jax import lax
from jax.experimental import pallas as pl
from jax.experimental.pallas import tpu as pltpu

NEG = -1.0e30  # finite "-inf" sentinel (keeps the log-space recursion NaN-free)


def _round_up(x, m):
    return ((x + m - 1) // m) * m


def _device_kind():
    try:
        return jax.devices()[0].device_kind.lower()
    except Exception:
        return ""


# ---------------------------------------------------------------------------
# Attention (cross-entropy) kernel
# ---------------------------------------------------------------------------
def _ce_kernel(x_ref, tgt_ref, out_ref, *, ignore_index, n_rows):
    # x_ref:   (tN, E)  logits (any float dtype); tail rows (beyond n_rows) are garbage
    # tgt_ref: (tN, 1)  int32 targets
    # out_ref: (1, 8, 128) lane-dense partials: row0 = sum(loss), row1 = valid count
    i = pl.program_id(0)
    tN = x_ref.shape[0]
    x = x_ref[...].astype(jnp.float32)
    tgt = tgt_ref[...]

    m = jnp.max(x, axis=-1, keepdims=True)
    lse = m + jnp.log(jnp.sum(jnp.exp(x - m), axis=-1, keepdims=True))
    cls = lax.broadcasted_iota(jnp.int32, x.shape, 1)
    tlogit = jnp.sum(jnp.where(cls == tgt, x, jnp.float32(0.0)),
                     axis=-1, keepdims=True)

    row = i * tN + lax.broadcasted_iota(jnp.int32, (tN, 1), 0)
    valid = jnp.logical_and(tgt != ignore_index, row < n_rows)
    loss = jnp.where(valid, lse - tlogit, jnp.float32(0.0))

    tile_sum = jnp.sum(loss)
    tile_cnt = jnp.sum(valid.astype(jnp.float32))
    sub = lax.broadcasted_iota(jnp.int32, out_ref.shape, 1)
    out_ref[...] = jnp.where(sub == 0, tile_sum,
                             jnp.where(sub == 1, tile_cnt, jnp.float32(0.0)))


def attention_loss(att_out, targets, *, ignore_index=-1):
    """nn.CrossEntropyLoss(reduction='mean', ignore_index) on flattened logits."""
    logits = jnp.asarray(att_out)
    E = logits.shape[-1]
    x = logits.reshape(-1, E)                    # no host-side padded copy
    tgt = jnp.asarray(targets, jnp.int32).reshape(-1, 1)
    N = x.shape[0]

    isz = x.dtype.itemsize
    # keep the double-buffered logit blocks under ~8 MiB (fits every chip's budget)
    tN = (8 << 20) // max(2 * E * isz, 1)
    tN = max(8, min(1024, (tN // 8) * 8))
    tN = min(tN, _round_up(N, 8))
    n_tiles = pl.cdiv(N, tN)

    need = 2 * tN * E * isz + 3 * tN * E * 4 + 2 * tN * 4 + 2 * 8 * 128 * 4 + (2 << 20)
    vmem_limit = int(min(max(int(1.5 * need), 32 << 20), 64 << 20))

    parts = pl.pallas_call(
        functools.partial(_ce_kernel, ignore_index=ignore_index, n_rows=N),
        out_shape=jax.ShapeDtypeStruct((n_tiles, 8, 128), jnp.float32),
        grid_spec=pltpu.PrefetchScalarGridSpec(
            num_scalar_prefetch=0,
            grid=(n_tiles,),
            in_specs=[pl.BlockSpec((tN, E), lambda i: (i, 0)),
                      pl.BlockSpec((tN, 1), lambda i: (i, 0))],
            out_specs=pl.BlockSpec((1, 8, 128), lambda i: (i, 0, 0))),
        compiler_params=pltpu.CompilerParams(
            dimension_semantics=("parallel",),
            vmem_limit_bytes=vmem_limit),
    )(x, tgt)

    total = jnp.sum(parts[:, 0, 0])
    count = jnp.maximum(jnp.sum(parts[:, 1, 0]), 1.0)
    return total / count


# ---------------------------------------------------------------------------
# CTC kernel
# ---------------------------------------------------------------------------
def _ctc_kernel(lp_ref, ext_ref, m1_ref, m2_ref, end_ref, out_ref,
                em_ref, alpha_ref, *,
                n_cblk, cblk, n_t, t_tile, tail_len, unroll):
    # lp_ref:    (bB, tT, cblk)  streamed log-probability (time tile, class chunk)
    # ext_ref:   (1, bB, Lp)     extended (blank-interleaved) labels, pad -> -1
    # m1_ref:    (1, bB, Lp)     additive mask for the s-1 term (NEG at s==0 / s>=L)
    # m2_ref:    (1, bB, Lp)     additive mask for the s-2 "skip" term
    # end_ref:   (1, bB, Lp)     additive mask selecting s in {2*len, 2*len-1}
    # out_ref:   (1, bB, 128)    per-batch negative log-likelihood (lane broadcast)
    # em_ref:    (tT, bB, Lp)    scratch: emissions for this time tile (batch on sublanes)
    # alpha_ref: (bB, Lp)        scratch: alpha carried across time tiles
    t_idx = pl.program_id(1)
    bB, Lp = alpha_ref.shape
    c_blk = lp_ref.shape[-1]

    # ---- emission gather for this (time tile, class chunk): one-hot MXU matmul ----
    lp = lp_ref[...]
    extb = ext_ref[0][:, :, None]                                   # (bB, Lp, 1)
    if n_cblk == 1:
        base = 0
    else:
        c_idx = pl.program_id(2)
        base = c_idx * cblk
    cls = lax.broadcasted_iota(jnp.int32, (bB, Lp, c_blk), 2) + base
    oh = (cls == extb).astype(lp.dtype)                             # (bB, Lp, c_blk)
    emc = lax.dot_general(lp, oh,
                          dimension_numbers=(((2,), (2,)), ((0,), (0,))),
                          preferred_element_type=jnp.float32)        # (bB, tT, Lp)
    emc = pltpu.einshape("btl->tbl", emc)                            # (tT, bB, Lp)
    if n_cblk == 1:
        em_ref[...] = emc
    else:
        @pl.when(c_idx == 0)
        def _():
            em_ref[...] = emc

        @pl.when(c_idx > 0)
        def _():
            em_ref[...] = em_ref[...] + emc

    if n_cblk == 1:
        def when_last_chunk(cond):
            return pl.when(cond)
    else:
        last_c = c_idx == (n_cblk - 1)

        def when_last_chunk(cond):
            return pl.when(jnp.logical_and(cond, last_c))

    m1 = m1_ref[0]                                                   # (bB, Lp)
    m2 = m2_ref[0]

    # log-space CTC forward recursion; alpha is a (bB, Lp) vreg-resident loop carry
    def chain(alpha, lo, hi):
        if hi <= lo:
            return alpha

        def step(t_loc, a):
            em_t = em_ref[t_loc]                                     # (bB, Lp)
            a1 = pltpu.roll(a, 1, 1) + m1                            # alpha[s-1]
            a2 = pltpu.roll(a, 2, 1) + m2                            # alpha[s-2] (skip)
            mm = jnp.maximum(jnp.maximum(a, a1), a2)
            lse = mm + jnp.log(jnp.exp(a - mm) + jnp.exp(a1 - mm) + jnp.exp(a2 - mm))
            return jnp.maximum(lse + em_t, NEG)

        return lax.fori_loop(lo, hi, step, alpha,
                             unroll=max(1, min(unroll, hi - lo)))

    def run_first():   # tile 0: init from the t==0 emission, then steps 1..tT
        lane = lax.broadcasted_iota(jnp.int32, (bB, Lp), 1)
        init_mask = jnp.where(lane < 2, jnp.float32(0.0), jnp.float32(NEG))
        a0 = jnp.maximum(em_ref[0] + init_mask, NEG)
        alpha_ref[...] = chain(a0, 1, t_tile)

    def run_mid():     # full interior tiles
        alpha_ref[...] = chain(alpha_ref[...], 0, t_tile)

    def run_last():    # statically shortened tail tile (no per-step guard)
        alpha_ref[...] = chain(alpha_ref[...], 0, tail_len)

    def run_readout():  # -logsumexp(alpha[2*len], alpha[2*len-1]) per batch row
        a_end = alpha_ref[...] + end_ref[0]
        mm = jnp.max(a_end, axis=-1, keepdims=True)
        ll = mm + jnp.log(jnp.sum(jnp.exp(a_end - mm), axis=-1, keepdims=True))
        out_ref[...] = jnp.broadcast_to(-ll[None, :, :], out_ref.shape)

    if n_t == 1 and n_cblk == 1:
        run_first()
        run_readout()
    else:
        when_last_chunk(t_idx == 0)(run_first)
        if n_t > 1:
            if tail_len == t_tile:
                when_last_chunk(t_idx > 0)(run_mid)
            else:
                when_last_chunk(jnp.logical_and(t_idx > 0, t_idx < n_t - 1))(run_mid)
                when_last_chunk(t_idx == n_t - 1)(run_last)
        when_last_chunk(t_idx == n_t - 1)(run_readout)


def ctc_loss(ctc_out, targets, target_lengths, *, blank_id=0):
    """nn.CTCLoss(blank, reduction='mean', zero_infinity=True); input_lengths = T.

    NOTE: as with nn.CTCLoss, ctc_out must already be log-probabilities
    (log_softmax over the class dim).
    """
    log_probs = jnp.asarray(ctc_out)                          # (B, T, C) log-probs
    targets = jnp.asarray(targets, jnp.int32)                 # (B, S_max)
    tlens = jnp.asarray(target_lengths, jnp.int32)            # (B,)

    B, T, C = log_probs.shape
    S_max = targets.shape[1]
    L = 2 * S_max + 1
    Lp = _round_up(L, 128)                                    # lane-dense extended-label dim

    kind = _device_kind()

    # batch block (packed onto sublanes); on dual-TensorCore parts keep the
    # parallel grid axis >= 2 so both cores get work
    want_multi = "v7" in kind
    bB = 1
    for d in range(1, min(B, 8) + 1):
        if B % d == 0 and (not want_multi or B // d >= 2 or B == 1):
            bB = d
    n_bblk = B // bB

    # class-dim chunking of the one-hot emission gather -> VMEM is O(cblk)
    cblk_max = 512
    while cblk_max > 128 and bB * Lp * cblk_max * 4 > (6 << 20):
        cblk_max //= 2
    if C <= cblk_max:
        cblk, n_cblk = C, 1
        lp_in = log_probs
    else:
        cblk = cblk_max
        Cpad = _round_up(C, cblk)
        n_cblk = Cpad // cblk
        # zero log-prob pad is never selected by the one-hot (labels < C)
        lp_in = log_probs if Cpad == C else jnp.pad(
            log_probs, ((0, 0), (0, 0), (0, Cpad - C)))

    # time tiling: 256 on v6e (MXU 256x256 / big VMEM), 128 elsewhere; the T % tT
    # tail is handled by a statically shortened chain in the last tile
    t_target = 256 if "v6" in kind else 128
    while t_target > 16 and t_target * bB * Lp * 4 > (8 << 20):
        t_target //= 2
    if T <= t_target:
        tT, n_t, tail_len = T, 1, T
    else:
        tT = t_target
        n_t = pl.cdiv(T, tT)
        tail_len = T - (n_t - 1) * tT

    # ---- glue: extended labels and additive log-space masks (plain JAX, tiny) ----
    s_idx = jnp.arange(L)
    is_label = (s_idx % 2) == 1
    ext = jnp.where(is_label[None, :],
                    targets[:, jnp.maximum((s_idx - 1) // 2, 0)], blank_id)     # (B, L)
    prev2 = jnp.where((is_label & (s_idx >= 2))[None, :],
                      targets[:, jnp.maximum((s_idx - 3) // 2, 0)], blank_id)
    allow2 = (is_label & (s_idx >= 2))[None, :] & (ext != prev2)                # (B, L)
    m1 = jnp.where(s_idx >= 1, 0.0, NEG)                                        # (L,)
    m2 = jnp.where(allow2, 0.0, NEG)                                            # (B, L)
    end = jnp.where((s_idx[None, :] == 2 * tlens[:, None])
                    | ((s_idx[None, :] == 2 * tlens[:, None] - 1)
                       & (tlens[:, None] > 0)), 0.0, NEG)                       # (B, L)

    ext_p = jnp.full((B, Lp), -1, jnp.int32).at[:, :L].set(ext).reshape(n_bblk, bB, Lp)
    m1_p = jnp.full((B, Lp), NEG, jnp.float32).at[:, :L].set(
        jnp.broadcast_to(m1, (B, L))).reshape(n_bblk, bB, Lp)
    m2_p = jnp.full((B, Lp), NEG, jnp.float32).at[:, :L].set(m2).reshape(n_bblk, bB, Lp)
    end_p = jnp.full((B, Lp), NEG, jnp.float32).at[:, :L].set(end).reshape(n_bblk, bB, Lp)

    isz = lp_in.dtype.itemsize
    need = (2 * bB * tT * cblk * isz        # streamed log-prob tiles (double-buffered)
            + 3 * bB * Lp * cblk * 4        # class iota + in-register one-hot operand
            + 2 * bB * tT * Lp * 4          # emission matmul result + transpose temp
            + tT * bB * Lp * 4              # emission scratch
            + bB * Lp * 4                   # alpha scratch
            + 10 * bB * Lp * 4              # masks / labels / output blocks
            + (2 << 20))
    vmem_limit = int(min(max(int(1.5 * need), 32 << 20), 64 << 20))

    kernel = functools.partial(_ctc_kernel, n_cblk=n_cblk, cblk=cblk,
                               n_t=n_t, t_tile=tT, tail_len=tail_len, unroll=8)
    out = pl.pallas_call(
        kernel,
        out_shape=jax.ShapeDtypeStruct((n_bblk, bB, 128), jnp.float32),
        grid_spec=pltpu.PrefetchScalarGridSpec(
            num_scalar_prefetch=0,
            grid=(n_bblk, n_t, n_cblk),
            in_specs=[
                pl.BlockSpec((bB, tT, cblk), lambda b, t, c: (b, t, c)),   # log-probs
                pl.BlockSpec((1, bB, Lp), lambda b, t, c: (b, 0, 0)),      # ext labels
                pl.BlockSpec((1, bB, Lp), lambda b, t, c: (b, 0, 0)),      # s-1 mask
                pl.BlockSpec((1, bB, Lp), lambda b, t, c: (b, 0, 0)),      # s-2 mask
                pl.BlockSpec((1, bB, Lp), lambda b, t, c: (b, 0, 0)),      # end mask
            ],
            out_specs=pl.BlockSpec((1, bB, 128), lambda b, t, c: (b, 0, 0)),
            scratch_shapes=[
                pltpu.VMEM((tT, bB, Lp), jnp.float32),   # emissions (batch on sublanes)
                pltpu.VMEM((bB, Lp), jnp.float32),       # alpha carry across tiles
            ]),
        compiler_params=pltpu.CompilerParams(
            dimension_semantics=("parallel", "arbitrary", "arbitrary"),
            vmem_limit_bytes=vmem_limit),
    )(lp_in, ext_p, m1_p, m2_p, end_p)

    nll = out[:, :, 0].reshape(B)
    per_sample = jnp.where(nll > 1e29, 0.0, nll)              # zero_infinity=True
    per_sample = per_sample / jnp.maximum(tlens, 1).astype(jnp.float32)
    return jnp.mean(per_sample)


# ---------------------------------------------------------------------------
# Hybrid loss (matches Hybrid_Loss.forward)
# ---------------------------------------------------------------------------
def hybrid_loss(att_out, ctc_out, targets, target_lengths, *,
                blank_id=0, ignore_index=-1, ctc_rate=0.2):
    att = attention_loss(att_out, targets, ignore_index=ignore_index)
    ctc = ctc_loss(ctc_out, targets, target_lengths, blank_id=blank_id)
    loss = ctc_rate * ctc + (1.0 - ctc_rate) * att
    # TODO(synk): PyTorch returns ctc_loss.item()/att_loss.item() (host floats); we return JAX scalars.
    return loss, ctc, att


# ---------------------------------------------------------------------------
# numpy references (sanity check)
# ---------------------------------------------------------------------------
def _ce_ref_numpy(logits, targets, ignore_index):
    x = np.asarray(logits, np.float64).reshape(-1, logits.shape[-1])
    t = np.asarray(targets).reshape(-1)
    m = x.max(-1, keepdims=True)
    lse = (m + np.log(np.exp(x - m).sum(-1, keepdims=True)))[:, 0]
    tot, cnt = 0.0, 0
    for i in range(x.shape[0]):
        if int(t[i]) == ignore_index:
            continue
        tot += lse[i] - x[i, int(t[i])]
        cnt += 1
    return float(tot / max(cnt, 1))


def _ctc_ref_numpy(logp, targets, tlens, blank=0):
    B, T, C = logp.shape
    losses = []
    for b in range(B):
        S = int(tlens[b])
        ext = []
        for i in range(S):
            ext += [blank, int(targets[b, i])]
        ext += [blank]
        L = 2 * S + 1
        alpha = np.full(L, NEG)
        alpha[0] = logp[b, 0, blank]
        if L > 1:
            alpha[1] = logp[b, 0, ext[1]]
        for t in range(1, T):
            new = np.full(L, NEG)
            for s in range(L):
                cands = [alpha[s]]
                if s >= 1:
                    cands.append(alpha[s - 1])
                if s >= 2 and ext[s] != blank and ext[s] != ext[s - 2]:
                    cands.append(alpha[s - 2])
                m = max(cands)
                new[s] = max(m + np.log(sum(np.exp(c - m) for c in cands))
                             + logp[b, t, ext[s]], NEG)
            alpha = new
        m = max(alpha[L - 1], alpha[L - 2] if L > 1 else NEG)
        ll = m + np.log(np.exp(alpha[L - 1] - m)
                        + (np.exp(alpha[L - 2] - m) if L > 1 else 0.0))
        loss = -ll
        if loss > 1e29:
            loss = 0.0
        losses.append(loss / max(S, 1))
    return float(np.mean(losses))


if __name__ == "__main__":
    def run_case(key, B, S_max, T, C, lens):
        k1, k2, k3 = jax.random.split(key, 3)
        att_logits = jax.random.normal(k1, (B, S_max, C), dtype=jnp.float32)
        ctc_logp = jax.nn.log_softmax(
            jax.random.normal(k2, (B, T, C), dtype=jnp.float32), axis=-1)
        targets = jax.random.randint(k3, (B, S_max), 1, C, dtype=jnp.int32)  # 0 is blank
        target_lengths = jnp.asarray(lens, jnp.int32)
        pad = jnp.arange(S_max)[None, :] >= target_lengths[:, None]
        targets = jnp.where(pad, -1, targets)   # ignore_index padding

        loss, ctc, att = hybrid_loss(att_logits, ctc_logp, targets, target_lengths,
                                     blank_id=0, ignore_index=-1, ctc_rate=0.2)
        loss, ctc, att = map(jax.block_until_ready, (loss, ctc, att))

        ctc_ref = _ctc_ref_numpy(np.asarray(ctc_logp), np.asarray(targets),
                                 np.asarray(target_lengths), blank=0)
        att_ref = _ce_ref_numpy(np.asarray(att_logits), np.asarray(targets), -1)
        loss_ref = 0.2 * ctc_ref + 0.8 * att_ref

        def close(a, b):
            return abs(a - b) < 2e-2 + 2e-3 * abs(b)

        assert np.isfinite(float(loss)), float(loss)
        assert close(float(att), att_ref), ("att", float(att), att_ref)
        assert close(float(ctc), ctc_ref), ("ctc", float(ctc), ctc_ref)
        assert close(float(loss), loss_ref), ("loss", float(loss), loss_ref)

    key = jax.random.PRNGKey(0)
    k_small, k_big = jax.random.split(key)
    # small config: single time tile, single class chunk
    run_case(k_small, B=2, S_max=4, T=12, C=16, lens=[4, 3])
    # larger config: multiple time tiles with a partial tail, chunked class dim, bB > 1
    run_case(k_big, B=4, S_max=6, T=300, C=640, lens=[6, 5, 3, 6])
    print("KERNEL_OK")
</pallas_src>

<mosaic_0001>
module attributes {stable_mosaic.version = 11 : i64} {
  func.func @_ce_kernel(%arg0: i32, %arg1: memref<8x16xf32, #tpu.memory_space<vmem>>, %arg2: memref<8x1xi32, #tpu.memory_space<vmem>>, %arg3: memref<1x8x128xf32, #tpu.memory_space<vmem>>) attributes {dimension_semantics = [#tpu.dimension_semantics<parallel>], iteration_bounds = array<i64: 1>, scalar_prefetch = 0 : i64, scratch_operands = 0 : i64, tpu.core_type = #tpu.core_type<tc>, window_params = [{transform_indices = @transform_0, window_bounds = array<i64: 8, 16>}, {transform_indices = @transform_1, window_bounds = array<i64: 8, 1>}, {transform_indices = @transform_2, window_bounds = array<i64: 1, 8, 128>}]} {
    %c0 = arith.constant 0 : index
    %c0_0 = arith.constant 0 : index
    %0 = vector.load %arg1[%c0, %c0_0] : memref<8x16xf32, #tpu.memory_space<vmem>>, vector<8x16xf32>
    %c0_1 = arith.constant 0 : index
    %c0_2 = arith.constant 0 : index
    %1 = vector.load %arg2[%c0_1, %c0_2] : memref<8x1xi32, #tpu.memory_space<vmem>>, vector<8x1xi32>
    %cst = arith.constant dense<0xFF800000> : vector<8xf32>
    %2 = vector.multi_reduction <maximumf>, %0, %cst [1] : vector<8x16xf32> to vector<8xf32>
    %3 = vector.shape_cast %2 : vector<8xf32> to vector<8x1xf32>
    %4 = vector.broadcast %3 : vector<8x1xf32> to vector<8x16xf32>
    %5 = arith.subf %0, %4 : vector<8x16xf32>
    %6 = math.exp %5 : vector<8x16xf32>
    %cst_3 = arith.constant dense<0.000000e+00> : vector<8xf32>
    %7 = vector.multi_reduction <add>, %6, %cst_3 [1] : vector<8x16xf32> to vector<8xf32>
    %8 = vector.shape_cast %7 : vector<8xf32> to vector<8x1xf32>
    %9 = math.log %8 : vector<8x1xf32>
    %10 = arith.addf %3, %9 : vector<8x1xf32>
    %11 = tpu.iota {dimensions = array<i32: 1>} : vector<8x16xi32>
    %12 = vector.broadcast %1 : vector<8x1xi32> to vector<8x16xi32>
    %13 = arith.cmpi eq, %11, %12 : vector<8x16xi32>
    %cst_4 = arith.constant 0.000000e+00 : f32
    %14 = vector.broadcast %cst_4 : f32 to vector<8x16xf32>
    %15 = arith.select %13, %0, %14 : vector<8x16xi1>, vector<8x16xf32>
    %cst_5 = arith.constant dense<0.000000e+00> : vector<8xf32>
    %16 = vector.multi_reduction <add>, %15, %cst_5 [1] : vector<8x16xf32> to vector<8xf32>
    %17 = vector.shape_cast %16 : vector<8xf32> to vector<8x1xf32>
    %c8_i32 = arith.constant 8 : i32
    %18 = arith.muli %arg0, %c8_i32 : i32
    %19 = tpu.iota {dimensions = array<i32: 0>} : vector<8x1xi32>
    %20 = vector.broadcast %18 : i32 to vector<8x1xi32>
    %21 = arith.addi %20, %19 : vector<8x1xi32>
    %c-1_i32 = arith.constant -1 : i32
    %22 = vector.broadcast %c-1_i32 : i32 to vector<8x1xi32>
    %23 = arith.cmpi ne, %1, %22 : vector<8x1xi32>
    %c8_i32_6 = arith.constant 8 : i32
    %24 = vector.broadcast %c8_i32_6 : i32 to vector<8x1xi32>
    %25 = arith.cmpi slt, %21, %24 : vector<8x1xi32>
    %26 = arith.andi %23, %25 : vector<8x1xi1>
    %27 = arith.subf %10, %17 : vector<8x1xf32>
    %cst_7 = arith.constant 0.000000e+00 : f32
    %28 = vector.broadcast %cst_7 : f32 to vector<8x1xf32>
    %29 = arith.select %26, %27, %28 : vector<8x1xi1>, vector<8x1xf32>
    %30 = vector.shape_cast %29 : vector<8x1xf32> to vector<1x8x1xf32>
    %cst_8 = arith.constant dense<0.000000e+00> : vector<1xf32>
    %31 = vector.multi_reduction <add>, %30, %cst_8 [1, 2] : vector<1x8x1xf32> to vector<1xf32>
    %32 = vector.shape_cast %31 : vector<1xf32> to vector<1x1x1xf32>
    %33 = vector.extract %32[0, 0, 0] : f32 from vector<1x1x1xf32>
    %34 = arith.extui %26 : vector<8x1xi1> to vector<8x1xi32>
    %35 = arith.sitofp %34 : vector<8x1xi32> to vector<8x1xf32>
    %36 = vector.shape_cast %35 : vector<8x1xf32> to vector<1x8x1xf32>
    %cst_9 = arith.constant dense<0.000000e+00> : vector<1xf32>
    %37 = vector.multi_reduction <add>, %36, %cst_9 [1, 2] : vector<1x8x1xf32> to vector<1xf32>
    %38 = vector.shape_cast %37 : vector<1xf32> to vector<1x1x1xf32>
    %39 = vector.extract %38[0, 0, 0] : f32 from vector<1x1x1xf32>
    %40 = tpu.iota {dimensions = array<i32: 1>} : vector<1x8x128xi32>
    %c0_i32 = arith.constant 0 : i32
    %41 = vector.broadcast %c0_i32 : i32 to vector<1x8x128xi32>
    %42 = arith.cmpi eq, %40, %41 : vector<1x8x128xi32>
    %c1_i32 = arith.constant 1 : i32
    %43 = vector.broadcast %c1_i32 : i32 to vector<1x8x128xi32>
    %44 = arith.cmpi eq, %40, %43 : vector<1x8x128xi32>
    %cst_10 = arith.constant 0.000000e+00 : f32
    %45 = vector.broadcast %39 : f32 to vector<1x8x128xf32>
    %46 = vector.broadcast %cst_10 : f32 to vector<1x8x128xf32>
    %47 = arith.select %44, %45, %46 : vector<1x8x128xi1>, vector<1x8x128xf32>
    %48 = vector.broadcast %33 : f32 to vector<1x8x128xf32>
    %49 = arith.select %42, %48, %47 : vector<1x8x128xi1>, vector<1x8x128xf32>
    %c0_11 = arith.constant 0 : index
    %c0_12 = arith.constant 0 : index
    %c0_13 = arith.constant 0 : index
    %50 = vector.load %arg3[%c0_11, %c0_12, %c0_13] : memref<1x8x128xf32, #tpu.memory_space<vmem>>, vector<1x8x128xf32>
    tpu.vector_store %arg3[%c0_11, %c0_12, %c0_13], %49 {strides = array<i32>} : memref<1x8x128xf32, #tpu.memory_space<vmem>>, vector<1x8x128xf32>,
    return
  }
  func.func @transform_0(%arg0: i32) -> (i32, i32) {
    %c0_i32 = arith.constant 0 : i32
    %c0_i32_0 = arith.constant 0 : i32
    return %arg0, %c0_i32 : i32, i32
  }
  func.func @transform_1(%arg0: i32) -> (i32, i32) {
    %c0_i32 = arith.constant 0 : i32
    %c0_i32_0 = arith.constant 0 : i32
    return %arg0, %c0_i32 : i32, i32
  }
  func.func @transform_2(%arg0: i32) -> (i32, i32, i32) {
    %c0_i32 = arith.constant 0 : i32
    %c0_i32_0 = arith.constant 0 : i32
    %c0_i32_1 = arith.constant 0 : i32
    return %arg0, %c0_i32, %c0_i32_0 : i32, i32, i32
  }
}

</mosaic_0001>

<bundles_post_ra>
// kernel: tpu_custom_call.1
= control target key start
LH: loop header
LB: loop body
LE: loop exit
PB: predicated region body
PF: predicated region fallthrough
CT: control target
= control target key end

     0   :  { %vm14_vm0 = vcmask 130048   ;;  %s167_s0 = inlined_call_operand.vmem [shape: f32[8,16], index: 0, kind: input, shape index: {}]   ;;  %s168_s1 = inlined_call_operand.vmem [shape: s32[8,1], index: 1, kind: input, shape index: {}]   ;;  %s169_s2 = inlined_call_operand.hbm [shape: f32[1,8,128], index: 2, kind: output, shape index: {}]  }
   0x1   :  { %v12_v0 = vld [vmem:[%s167_s0] sm:$0xff] }
   0x2   :  { %7 = vsyncpa [#allocation3], 0  ;;  %v15_v1 = vsel %vm14_vm0, %v12_v0, -inf  ;;  %v128_v2 = vmov 0   ;;  %v13_v3 = vld [vmem:[%s168_s1] sm:$0xff]  ;;  %v27_v7 = vlaneseq  ;;  %vm47_vm3 = vcmask 7168  }
   0x3   :  { %99 = vset.pattern.permute.xlu0 %v128_v2  ;;  %vm42_vm2 = vcmp.ne.s32.totalorder %v13_v3, 4294967295  ;;  %v129_v21 = vmov 0.0   ;;  %s130_s1 = smov [#allocation2]  }
   0x4   :  { %16 = vmax.xlane.f32.xlu0 %v15_v1  ;;  %v28_v8 = vand.u32 127, %v27_v7  ;;  %v91_v22 = vsel %vm42_vm2, 1.0, %v129_v21  ;;  %v39_v39 = vshrl.u32 %v27_v7, 7  ;;  %s83_s13 = sshll.u32 %s130_s1, 4  ;;  %s84_s13 = int_to_ptr.vmem [resolvable:$true] %s83_s13 }
   0x5   :  { %v60_v24 = vsel %vm47_vm3, %v91_v22, 0.0  ;;  %s104_s15 = scalar_lea.vmem %s84_s13, 128  ;;  %p109_p1 = scmp.lt.s32.totalorder %s84_s13, %s84_s13 }
   0x6   :  { %vm71_vm4 = vcmp.eq.s32.totalorder %v39_v39, 1  ;;  %vm70_vm5 = vcmp.eq.s32.totalorder %v39_v39, 0  ;;  %p105_p0 = scmp.ne.s32.totalorder %s84_s13, %s104_s15  ;;  %p110_p2 = scmp.lt.s32.totalorder %s104_s15, %s104_s15 }
   0x8   :  { %p111_p3 = por %p110_p2, %p109_p1 }
   0xa   :  { %p112_p4 = pnand %p111_p3, %p105_p0 }
  0x1a   :  { %30 = vperm.xlu0 %99, %v13_v3  }
  0x91   :  { %v17_v4 = vpop.xlane.xlu0 %16 }
  0x92   :  { %v18_v5 = vsub.f32 %v12_v0, %v17_v4 }
  0x94   :  { %v19_v6 = vmul.f32 1.442695, %v18_v5 }
  0x96   :  { %100 = vpow2.f32 %v19_v6 }
  0x99   :  { %v31_v9 = vpop.permute.xlu0 %30 }
  0x9a   :  { %vm32_vm1 = vcmp.eq.s32.totalorder %v28_v8, %v31_v9 }
  0x9b   :  { %v33_v11 = vsel %vm32_vm1, %v12_v0, 0.0 }
  0x9c   :  { %v34_v13 = vsel %vm14_vm0, %v33_v11, 0.0 }
  0xa0   :  { %v101_v10 = vpop.eup %100 }
  0xa1   :  { %v21_v12 = vsel %vm14_vm0, %v101_v10, 0.0 }
  0xa2   :  { %22 = vadd.xlane.f32.xlu1 %v21_v12 }
  0xa6   :  { %35 = vadd.xlane.f32.xlu1 %v34_v13 }
 0x12f   :  { %v23_v14 = vpop.xlane.xlu1 %22 }
 0x130   :  { %102 = vlog2.f32 %v23_v14 }
 0x133   :  { %v36_v17 = vpop.xlane.xlu1 %35 }
 0x13a   :  { %v103_v15 = vpop.eup %102 }
 0x13b   :  { %v25_v16 = vmul.f32 0.6931472, %v103_v15 }
 0x13d   :  { %v26_v18 = vadd.f32 %v25_v16, %v17_v4 }
 0x13f   :  { %v45_v19 = vsub.f32 %v26_v18, %v36_v17 }
 0x141   :  { %v46_v20 = vsel %vm42_vm2, %v45_v19, 0.0 }
 0x142   :  { %v48_v23 = vsel %vm47_vm3, %v46_v20, 0.0 }
 0x143   :  { %49 = vadd.xlane.f32.xlu1 %v48_v23 }
 0x147   :  { %61 = vadd.xlane.f32.xlu1 %v60_v24 }
 0x1d0   :  { %v50_v25 = vpop.xlane.xlu1 %49 }
 0x1d1   :  { %v51_v26 = vrot.slane %v50_v25, 4 }
 0x1d3   :  { %v52_v27 = vadd.f32 %v51_v26, %v50_v25 }
 0x1d4   :  { %v62_v28 = vpop.xlane.xlu1 %61 }
 0x1d5   :  { %v53_v29 = vrot.slane %v52_v27, 2  ;;  %v63_v30 = vrot.slane %v62_v28, 4 }
 0x1d7   :  { %v64_v31 = vadd.f32 %v63_v30, %v62_v28  ;;  %v54_v32 = vadd.f32 %v53_v29, %v52_v27 }
 0x1d9   :  { %v65_v33 = vrot.slane %v64_v31, 2  ;;  %v55_v34 = vrot.slane %v54_v32, 1 }
 0x1db   :  { %v66_v35 = vadd.f32 %v65_v33, %v64_v31  ;;  %v56_v36 = vadd.f32 %v55_v34, %v54_v32 }
 0x1dd   :  { %92 = vpush %v56_v36  ;;  %v67_v37 = vrot.slane %v66_v35, 1 }
 0x1df   :  { %v68_v38 = vadd.f32 %v67_v37, %v66_v35 }
 0x1e1   :  { %94 = vpush %v68_v38 }
 0x20e   :  { %s93_s0 = spop %92 }
 0x20f   :  { %v74_v41 = vstv %s93_s0 }
 0x212   :  { %s95_s14 = spop %94 }
 0x213   :  { %v72_v40 = vstv %s95_s14 }
 0x214   :  { %v73_v42 = vsel %vm71_vm4, %v72_v40, 0.0 }
 0x215   :  { %v75_v43 = vsel %vm70_vm5, %v74_v41, %v73_v42 }
 0x216   :  { %76 = vst [vmem:[#allocation2] sm:$0xff] %v75_v43 }
 0x217   :  { %115 = shalt.err (!%p112_p4)
}
 0x218   :  { %s116_s18 = scalar_lea.hbm %s169_s2, 128 }
 0x219   :  { %p117_p5 = scmp.ne.s32.totalorder %s169_s2, %s116_s18  ;;  %p120_p6 = scmp.lt.u32.totalorder %s116_s18, %s169_s2 }
 0x21b   :  { %p122_p7 = pnand %p120_p6, %p117_p5 }
 0x21d   :  { %125 = shalt.err (!%p122_p7)
}
 0x21e   :  { %86 = dma.vmem_to_hbm [thread:$0]  %s84_s13, 128, %s169_s2, [#allocation3]  }
 0x21f   :  { %126 = dma.done.wait [#allocation3], 128  }
 0x220   :  { %127 = vsyncadd [#allocation3], 4294967168 }
 0x221   :  { %90 = vsyncpa [#allocation3], 1 }

</bundles_post_ra>
